<compile_context>
chip_gen: v6e
topology: v6e:2x2x1
jax: 0.10.0
libtpu: 0.0.40
codegen_flags: <defaults>
</compile_context>

<pallas_src>
import math
import jax
import jax.numpy as jnp
from jax.experimental import pallas as pl
from jax.experimental.pallas import tpu as pltpu

LANE = 128


def pick_batch_tile(B, L):
    """Smallest divisor of B that fills >=256 MXU rows (v6e/v7x) and keeps the
    output block's sublane dim legal (TB == B or TB % 8 == 0); else B."""
    if B * L <= 256:
        return B
    target = max(1, pl.cdiv(256, L))
    for tb in range(1, B + 1):
        if B % tb:
            continue
        if tb != B and tb % 8:
            continue
        if tb >= target:
            return tb
    return B


def pack_params(weights, biases, kernel_sizes, lane=LANE):
    """weights[i]: (F, D, h_i) in PyTorch Conv1d layout; biases[i]: (F,).
    Pre-transpose each tap to (D, F) wrapper-side (never in-kernel) and pad it
    to a full 128-lane column block so every in-kernel tap slice is
    lane-tile aligned.  Padded weight/bias columns are zero -> padded output
    lanes are exactly relu(0 + 0) = 0 and are sliced off after the call.
    Returns bf16 w_all (D, sum(h)*Fp), f32 b_all (1, n_ks*Fp), and Fp."""
    F, D = weights[0].shape[0], weights[0].shape[1]
    Fp = ((F + lane - 1) // lane) * lane
    cols = []
    for w, h in zip(weights, kernel_sizes):
        for j in range(h):
            blk = jnp.zeros((D, Fp), jnp.float32)
            blk = blk.at[:, :F].set(jnp.transpose(w[:, :, j]))   # (D, Fp)
            cols.append(blk)
    w_all = jnp.concatenate(cols, axis=-1)                       # (D, n_taps*Fp)
    bcols = []
    for b in biases:
        bb = jnp.zeros((Fp,), jnp.float32)
        bcols.append(bb.at[:F].set(b))
    b_all = jnp.concatenate(bcols, axis=-1)[None, :]             # (1, n_ks*Fp)
    return w_all.astype(jnp.bfloat16), b_all, Fp


def onedim_cnn_pallas(x, w_all, b_all, kernel_sizes, filters, f_pad):
    """x: (B, L, D) f32.  w_all: (D, sum(h)*Fp) bf16 tap-packed/lane-padded.
    b_all: (1, n_ks*Fp) f32.  Returns (B, n_ks*filters) f32 (eval-mode
    dropout = identity)."""
    B, L, D = x.shape
    F, Fp = filters, f_pad
    n_ks = len(kernel_sizes)
    n_taps = sum(kernel_sizes)
    n_cols = n_taps * Fp          # matmul output lanes
    n_out_pad = n_ks * Fp         # padded, lane-dense kernel output width

    TB = pick_batch_tile(B, L)
    assert B % TB == 0, (B, TB)

    x = x.astype(jnp.bfloat16)    # half the DMA bytes, 2x MXU rate; acc stays f32

    def kernel(x_ref, w_ref, b_ref, out_ref):
        # (TB, L, D) -> (TB*L, D): leading-dim merge only (layout-preserving;
        # L is a multiple of the sublane tile) -> one fused MXU matmul covering
        # every tap of every conv with maximal row utilization.
        x2 = x_ref[...].reshape(TB * L, D)
        y = jnp.dot(x2, w_ref[...], preferred_element_type=jnp.float32)
        y = y.reshape(TB, L, n_cols)          # leading-dim split, cheap

        tap = 0
        for i, h in enumerate(kernel_sizes):  # static Python loop (unrolled)
            Lh = L - h + 1                    # valid conv output positions
            # Every tap slice starts at tap*Fp, a 128-lane boundary: no XLU
            # lane relayout.  The j-shifts are cheap sublane selects.
            acc = y[:, 0:Lh, tap * Fp:(tap + 1) * Fp]
            tap += 1
            for j in range(1, h):             # shifted adds == conv taps
                acc = acc + y[:, j:j + Lh, tap * Fp:(tap + 1) * Fp]
                tap += 1
            pooled = jnp.max(acc, axis=1)     # global max-pool: (TB, Fp)
            # bias + ReLU hoisted past the max (valid: bias is
            # position-independent and ReLU is monotone).  Lane-dense,
            # lane-aligned store directly into the output block.
            out_ref[:, i * Fp:(i + 1) * Fp] = jnp.maximum(
                pooled + b_ref[:, i * Fp:(i + 1) * Fp], 0.0
            ).astype(out_ref.dtype)

    flops = 2 * B * L * D * n_cols + B * L * (n_taps - n_ks) * Fp
    bytes_accessed = (B * L * D * 2 + D * n_cols * 2
                      + n_out_pad * 4 + B * n_out_pad * 4)

    out = pl.pallas_call(
        kernel,
        out_shape=jax.ShapeDtypeStruct((B, n_out_pad), jnp.float32),
        grid=(B // TB,),
        in_specs=[
            pl.BlockSpec((TB, L, D), lambda b: (b, 0, 0)),
            pl.BlockSpec((D, n_cols), lambda b: (0, 0)),      # grid-invariant
            pl.BlockSpec((1, n_out_pad), lambda b: (0, 0)),   # grid-invariant
        ],
        out_specs=pl.BlockSpec((TB, n_out_pad), lambda b: (b, 0)),
        compiler_params=pltpu.CompilerParams(
            dimension_semantics=("parallel",)),               # v7x megacore
        cost_estimate=pl.CostEstimate(
            flops=flops, transcendentals=0, bytes_accessed=bytes_accessed),
    )(x, w_all, b_all)

    # Drop the zero-padded lanes; ordering matches torch.cat over kernel sizes.
    # TODO(synk): training-mode dropout (p) would go here; eval mode = identity.
    return jnp.concatenate(
        [out[:, i * Fp:i * Fp + F] for i in range(n_ks)], axis=-1)


if __name__ == "__main__":
    # Small shapes consistent with the module: batch=2, max_byte_len=16,
    # d_dim=32, filters=32, kernel_size=[3, 4].
    B, L, D, F = 2, 16, 32, 32
    kernel_sizes = (3, 4)

    root = jax.random.PRNGKey(0)
    keys = jax.random.split(root, 1 + 2 * len(kernel_sizes))
    kx, wkeys = keys[0], keys[1:]

    x = jax.random.normal(kx, (B, L, D), dtype=jnp.float32)

    # Conv1d-style init: U(-sqrt(k), sqrt(k)), k = 1/(in_channels*kernel_size)
    weights, biases = [], []
    for i, h in enumerate(kernel_sizes):
        bound = 1.0 / math.sqrt(D * h)
        weights.append(jax.random.uniform(
            wkeys[2 * i], (F, D, h), minval=-bound, maxval=bound,
            dtype=jnp.float32))
        biases.append(jax.random.uniform(
            wkeys[2 * i + 1], (F,), minval=-bound, maxval=bound,
            dtype=jnp.float32))

    w_all, b_all, f_pad = pack_params(weights, biases, kernel_sizes)

    out = onedim_cnn_pallas(x, w_all, b_all, kernel_sizes, F, f_pad)
    jax.block_until_ready(out)

    # Pure-JAX reference of the PyTorch forward (conv -> relu -> global max
    # pool -> cat -> view; dropout is identity in eval mode).  Inputs are
    # rounded to bf16 exactly as the kernel sees them; math stays f32.
    x_r = x.astype(jnp.bfloat16).astype(jnp.float32)
    w_r = [w.astype(jnp.bfloat16).astype(jnp.float32) for w in weights]

    def ref(x, weights, biases):
        outs = []
        for w, b, h in zip(weights, biases, kernel_sizes):
            Lh = L - h + 1
            conv = jnp.zeros((B, Lh, F), jnp.float32) + b[None, None, :]
            for j in range(h):
                conv = conv + jnp.einsum('blc,fc->blf',
                                         x[:, j:j + Lh, :], w[:, :, j])
            outs.append(jnp.max(jnp.maximum(conv, 0.0), axis=1))
        return jnp.concatenate(outs, axis=-1)

    ref_out = ref(x_r, w_r, biases)
    assert out.shape == (B, len(kernel_sizes) * F)
    err = float(jnp.max(jnp.abs(out - ref_out)))
    assert jnp.allclose(out, ref_out, atol=1e-3, rtol=1e-3), err

    print("KERNEL_OK")
</pallas_src>

<mosaic_0001>
module attributes {stable_mosaic.version = 11 : i64} {
  func.func @kernel(%arg0: i32, %arg1: memref<2x16x32xbf16, #tpu.memory_space<vmem>>, %arg2: memref<32x896xbf16, #tpu.memory_space<vmem>>, %arg3: memref<1x256xf32, #tpu.memory_space<vmem>>, %arg4: memref<2x256xf32, #tpu.memory_space<vmem>>) attributes {dimension_semantics = [#tpu.dimension_semantics<parallel>], iteration_bounds = array<i64: 1>, scalar_prefetch = 0 : i64, scratch_operands = 0 : i64, tpu.core_type = #tpu.core_type<tc>, window_params = [{transform_indices = @transform_0, window_bounds = array<i64: 2, 16, 32>}, {pipeline_mode = #tpu.pipeline_mode<synchronous>, transform_indices = @transform_1, window_bounds = array<i64: 32, 896>}, {pipeline_mode = #tpu.pipeline_mode<synchronous>, transform_indices = @transform_2, window_bounds = array<i64: 1, 256>}, {transform_indices = @transform_3, window_bounds = array<i64: 2, 256>}]} {
    %c0 = arith.constant 0 : index
    %c0_0 = arith.constant 0 : index
    %c0_1 = arith.constant 0 : index
    %0 = vector.load %arg1[%c0, %c0_0, %c0_1] : memref<2x16x32xbf16, #tpu.memory_space<vmem>>, vector<2x16x32xbf16>
    %1 = vector.shape_cast %0 : vector<2x16x32xbf16> to vector<32x32xbf16>
    %c0_2 = arith.constant 0 : index
    %c0_3 = arith.constant 0 : index
    %2 = vector.load %arg2[%c0_2, %c0_3] : memref<32x896xbf16, #tpu.memory_space<vmem>>, vector<32x896xbf16>
    %cst = arith.constant dense<0.000000e+00> : vector<32x896xf32>
    %3 = tpu.matmul %1, %2, %cst {dimension_numbers = #tpu.dot_dimension_numbers<[1], [0], [0], [1], [0, 0, 1, 1], [], []>} : vector<32x32xbf16>, vector<32x896xbf16>, vector<32x896xf32> -> vector<32x896xf32>
    %4 = vector.shape_cast %3 : vector<32x896xf32> to vector<2x16x896xf32>
    %5 = vector.extract_strided_slice %4 {offsets = [0, 0, 0], sizes = [2, 14, 128], strides = [1, 1, 1]} : vector<2x16x896xf32> to vector<2x14x128xf32>
    %6 = vector.extract_strided_slice %4 {offsets = [0, 1, 128], sizes = [2, 14, 128], strides = [1, 1, 1]} : vector<2x16x896xf32> to vector<2x14x128xf32>
    %7 = arith.addf %5, %6 : vector<2x14x128xf32>
    %8 = vector.extract_strided_slice %4 {offsets = [0, 2, 256], sizes = [2, 14, 128], strides = [1, 1, 1]} : vector<2x16x896xf32> to vector<2x14x128xf32>
    %9 = arith.addf %7, %8 : vector<2x14x128xf32>
    %cst_4 = arith.constant dense<0xFF800000> : vector<2x128xf32>
    %10 = vector.multi_reduction <maximumf>, %9, %cst_4 [1] : vector<2x14x128xf32> to vector<2x128xf32>
    %c0_5 = arith.constant 0 : index
    %c0_6 = arith.constant 0 : index
    %11 = vector.load %arg3[%c0_5, %c0_6] : memref<1x256xf32, #tpu.memory_space<vmem>>, vector<1x128xf32>
    %12 = vector.broadcast %11 : vector<1x128xf32> to vector<2x128xf32>
    %13 = arith.addf %10, %12 : vector<2x128xf32>
    %cst_7 = arith.constant 0.000000e+00 : f32
    %14 = vector.broadcast %cst_7 : f32 to vector<2x128xf32>
    %15 = arith.maximumf %13, %14 : vector<2x128xf32>
    %c0_8 = arith.constant 0 : index
    %c0_9 = arith.constant 0 : index
    %16 = vector.load %arg4[%c0_8, %c0_9] : memref<2x256xf32, #tpu.memory_space<vmem>>, vector<2x128xf32>
    tpu.vector_store %arg4[%c0_8, %c0_9], %15 {strides = array<i32>} : memref<2x256xf32, #tpu.memory_space<vmem>>, vector<2x128xf32>,
    %17 = vector.extract_strided_slice %4 {offsets = [0, 0, 384], sizes = [2, 13, 128], strides = [1, 1, 1]} : vector<2x16x896xf32> to vector<2x13x128xf32>
    %18 = vector.extract_strided_slice %4 {offsets = [0, 1, 512], sizes = [2, 13, 128], strides = [1, 1, 1]} : vector<2x16x896xf32> to vector<2x13x128xf32>
    %19 = arith.addf %17, %18 : vector<2x13x128xf32>
    %20 = vector.extract_strided_slice %4 {offsets = [0, 2, 640], sizes = [2, 13, 128], strides = [1, 1, 1]} : vector<2x16x896xf32> to vector<2x13x128xf32>
    %21 = arith.addf %19, %20 : vector<2x13x128xf32>
    %22 = vector.extract_strided_slice %4 {offsets = [0, 3, 768], sizes = [2, 13, 128], strides = [1, 1, 1]} : vector<2x16x896xf32> to vector<2x13x128xf32>
    %23 = arith.addf %21, %22 : vector<2x13x128xf32>
    %cst_10 = arith.constant dense<0xFF800000> : vector<2x128xf32>
    %24 = vector.multi_reduction <maximumf>, %23, %cst_10 [1] : vector<2x13x128xf32> to vector<2x128xf32>
    %c0_11 = arith.constant 0 : index
    %c128 = arith.constant 128 : index
    %25 = vector.load %arg3[%c0_11, %c128] : memref<1x256xf32, #tpu.memory_space<vmem>>, vector<1x128xf32>
    %26 = vector.broadcast %25 : vector<1x128xf32> to vector<2x128xf32>
    %27 = arith.addf %24, %26 : vector<2x128xf32>
    %cst_12 = arith.constant 0.000000e+00 : f32
    %28 = vector.broadcast %cst_12 : f32 to vector<2x128xf32>
    %29 = arith.maximumf %27, %28 : vector<2x128xf32>
    %c0_13 = arith.constant 0 : index
    %c128_14 = arith.constant 128 : index
    %30 = vector.load %arg4[%c0_13, %c128_14] : memref<2x256xf32, #tpu.memory_space<vmem>>, vector<2x128xf32>
    tpu.vector_store %arg4[%c0_13, %c128_14], %29 {strides = array<i32>} : memref<2x256xf32, #tpu.memory_space<vmem>>, vector<2x128xf32>,
    return
  }
  func.func @transform_0(%arg0: i32) -> (i32, i32, i32) {
    %c0_i32 = arith.constant 0 : i32
    %c0_i32_0 = arith.constant 0 : i32
    %c0_i32_1 = arith.constant 0 : i32
    return %arg0, %c0_i32, %c0_i32_0 : i32, i32, i32
  }
  func.func @transform_1(%arg0: i32) -> (i32, i32) {
    %c0_i32 = arith.constant 0 : i32
    %c0_i32_0 = arith.constant 0 : i32
    %c0_i32_1 = arith.constant 0 : i32
    return %c0_i32, %c0_i32_0 : i32, i32
  }
  func.func @transform_2(%arg0: i32) -> (i32, i32) {
    %c0_i32 = arith.constant 0 : i32
    %c0_i32_0 = arith.constant 0 : i32
    %c0_i32_1 = arith.constant 0 : i32
    return %c0_i32, %c0_i32_0 : i32, i32
  }
  func.func @transform_3(%arg0: i32) -> (i32, i32) {
    %c0_i32 = arith.constant 0 : i32
    %c0_i32_0 = arith.constant 0 : i32
    return %arg0, %c0_i32 : i32, i32
  }
}

</mosaic_0001>

<bundles_post_ra>
// kernel: tpu_custom_call.1
= control target key start
LH: loop header
LB: loop body
LE: loop exit
PB: predicated region body
PF: predicated region fallthrough
CT: control target
= control target key end

     0   :  { %8 = vsyncpa [#allocation3], 0  ;;  %s795_s0 = inlined_call_operand.hbm [shape: bf16[2,16,32], index: 0, kind: input, shape index: {}]   ;;  %s796_s1 = inlined_call_operand.hbm [shape: bf16[32,896], index: 1, kind: input, shape index: {}]   ;;  %s797_s2 = inlined_call_operand.vmem [shape: f32[1,256], index: 2, kind: input, shape index: {}]   ;;  %s798_s3 = inlined_call_operand.hbm [shape: f32[2,256], index: 3, kind: output, shape index: {}]  }
   0x1   :  { %9 = vsyncpa [#allocation6], 0 }
   0x2   :  { %10 = vsyncpa [#allocation4], 0  ;;  %s715_s12 = smov [#allocation2]  }
   0x3   :  { %s16_s13 = sshll.u32 %s715_s12, 4  ;;  %s17_s13 = int_to_ptr.vmem [resolvable:$true] %s16_s13 }
   0x4   :  { %s657_s14 = scalar_lea.vmem %s17_s13, 256  ;;  %p662_p1 = scmp.lt.s32.totalorder %s17_s13, %s17_s13 }
   0x5   :  { %p658_p0 = scmp.ne.s32.totalorder %s17_s13, %s657_s14  ;;  %p663_p2 = scmp.lt.s32.totalorder %s657_s14, %s657_s14 }
   0x7   :  { %p664_p3 = por %p663_p2, %p662_p1 }
   0x9   :  { %p665_p4 = pnand %p664_p3, %p658_p0 }
   0xb   :  { %668 = shalt.err (!%p665_p4)
}
   0xc   :  { %s716_s15 = smov 64   ;;  %s717_s16 = smov 4  }
   0xd   :  { %22 = dma.hbm_to_vmem [thread:$0]  %s795_s0, 256, %s17_s13, [#allocation3], %s716_s15, %s716_s15, %s717_s16  }
   0xe   :  { %s718_s19 = smov [#allocation5]  }
   0xf   :  { %s28_s20 = sshll.u32 %s718_s19, 4  ;;  %s29_s20 = int_to_ptr.vmem [resolvable:$true] %s28_s20 }
  0x10   :  { %s677_s21 = scalar_lea.vmem %s29_s20, 1792  ;;  %p682_p6 = scmp.lt.s32.totalorder %s29_s20, %s29_s20 }
  0x11   :  { %p678_p5 = scmp.ne.s32.totalorder %s29_s20, %s677_s21  ;;  %p683_p7 = scmp.lt.s32.totalorder %s677_s21, %s677_s21 }
  0x13   :  { %p684_p8 = por %p683_p7, %p682_p6 }
  0x15   :  { %p685_p9 = pnand %p684_p8, %p678_p5 }
  0x17   :  { %688 = shalt.err (!%p685_p9)
}
  0x18   :  { %s719_s22 = smov 448   ;;  %s720_s23 = smov 28  }
  0x19   :  { %34 = dma.hbm_to_vmem [thread:$0]  %s796_s1, 1792, %s29_s20, [#allocation6], %s719_s22, %s719_s22, %s720_s23  }
  0x1a   :  { %709 = dma.done.wait [#allocation3], 256  }
  0x1b   :  { %710 = vsyncadd [#allocation3], 4294967040 }
  0x1c   :  { %711 = dma.done.wait [#allocation6], 1792  }
  0x1d   :  { %712 = vsyncadd [#allocation6], 4294965504  ;;  %v721_v0 = vmov 0   ;;  %v627_v1 = vld [vmem:[#allocation5 + $0x3c] ss:$28 sps:$4 sm:$0xff]   ;;  %v639_v9 = vld [vmem:[#allocation2] sm:$0xff]  }
  0x1e   :  { %185 = vmatprep.mubr.bf16.mxu0 %v721_v0  ;;  %238 = vmatprep.mubr.bf16.mxu1 %v721_v0  ;;  %v629_v2 = vld [vmem:[#allocation5 + $0x38] ss:$28 sps:$4 sm:$0xff]   ;;  %v630_v3 = vld [vmem:[#allocation5 + $0x44] ss:$28 sps:$4 sm:$0xff]   ;;  %v636_v7 = vld [vmem:[#allocation5 + $0xc] ss:$28 sps:$4 sm:$0xff]  }
  0x1f   :  { %165 = vmatprep.subr.bf16.mxu0 %v627_v1  ;;  %v632_v4 = vld [vmem:[#allocation5 + $0x40] ss:$28 sps:$4 sm:$0xff]   ;;  %218 = vmatprep.subr.bf16.mxu1 %v630_v3  ;;  %v638_v8 = vld [vmem:[#allocation5 + $0x8] ss:$28 sps:$4 sm:$0xff]   ;;  %vm146_vm0 = vcmask 261120   ;;  %vm365_vm1 = vcmask 1046528  }
  0x20   :  { %166 = vmatpush1.bf16.msra.mxu0 %v629_v2  ;;  %v633_v5 = vld [vmem:[#allocation5 + $0x4] ss:$28 sps:$4 sm:$0xff]   ;;  %219 = vmatpush1.bf16.msra.mxu1 %v632_v4  ;;  %v642_v11 = vld [vmem:[#allocation5 + $0x4c] ss:$28 sps:$4 sm:$0xff]   ;;  %v646_v13 = vld [vmem:[#allocation5 + $0x14] ss:$28 sps:$4 sm:$0xff]  }
  0x21   :  { %v635_v6 = vld [vmem:[#allocation5] ss:$28 sps:$4 sm:$0xff]   ;;  %167 = vmatprep.subr.bf16.mxu0 %v633_v5  ;;  %220 = vmatprep.subr.bf16.mxu1 %v636_v7  ;;  %v640_v10 = vld [vmem:[#allocation5 + $0x48] ss:$28 sps:$4 sm:$0xff]   ;;  %v644_v12 = vld [vmem:[#allocation5 + $0x10] ss:$28 sps:$4 sm:$0xff]  }
  0x22   :  { %v647_v14 = vld [vmem:[#allocation5 + $0x50] ss:$28 sps:$4 sm:$0xff]   ;;  %v648_v15 = vld [vmem:[#allocation5 + $0x18] ss:$28 sps:$4 sm:$0xff]   ;;  %vm384_vm2 = vcmask 1045504   ;;  %vm497_vm3 = vcmask 1044480  }
  0x23   :  { %v643_v16 = vld [vmem:[#allocation2 + $0x8] sm:$0xff]   ;;  %vm447_vm4 = vcmask 1041409   ;;  %vm449_vm5 = vcmask 1043459   ;;  %vm451_vm6 = vcmask 1045509   ;;  %vm453_vm7 = vcmask 1047559   ;;  %s723_s28 = smov [#allocation7]  }
  0x24   :  { %168 = vmatpush1.bf16.msra.mxu0 %v635_v6  ;;  %221 = vmatpush1.bf16.msra.mxu1 %v638_v8  ;;  %s570_s29 = sshll.u32 %s723_s28, 4  ;;  %s571_s29 = int_to_ptr.vmem [resolvable:$true] %s570_s29 }
  0x25   :  { %271 = vmatprep.subr.bf16.mxu0 %v642_v11  ;;  %610 = vmatprep.subr.bf16.mxu1 %v647_v14  ;;  %p694_p11 = scmp.lt.s32.totalorder %s571_s29, %s571_s29 }
  0x27   :  { %596 = vmatmul.mubr.msk.bf16.vlgmr.msra.gmra.mxu0 %vm146_vm0, %v639_v9  ;;  %598 = vmatmul.mubr.msk.bf16.vlgmr.msra.gmra.mxu1 %vm146_vm0, %v639_v9 }
  0x28   :  { %272 = vmatpush1.bf16.msra.mxu0 %v640_v10  ;;  %195 = vmatprep.mubr.bf16.mxu0 %v721_v0 }
  0x29   :  { %273 = vmatprep.subr.bf16.mxu0 %v646_v13  ;;  %248 = vmatprep.mubr.bf16.mxu1 %v721_v0 }
  0x2a   :  { %611 = vmatpush3.bf16.msra.mxu1 %v647_v14 }
  0x2b   :  { %612 = vmatprep.subr.bf16.mxu1 %v648_v15 }
  0x2c   :  { %274 = vmatpush1.bf16.msra.mxu0 %v644_v12 }
  0x2e   :  { %613 = vmatpush3.bf16.msra.mxu1 %v648_v15 }
  0x2f   :  { %597 = vmatmul.mubr.msk.bf16.gmra.mxu0 %vm146_vm0, %v643_v16  ;;  %599 = vmatmul.mubr.msk.bf16.gmra.mxu1 %vm146_vm0, %v643_v16 }
  0x30   :  { %291 = vmatprep.mubr.bf16.mxu0 %v721_v0  ;;  %614 = vmatprep.mubr.msk.bf16.mxu1 %vm146_vm0, %v639_v9 }
  0x37   :  { %600 = vmatmul.mubr.msk.bf16.vlgmr.msra.gmra.mxu0 %vm146_vm0, %v639_v9  ;;  %615 = vmatmul.mubr.msk.bf16.vlgmr.msra.gmra.mxu1 %vm146_vm0, %v643_v16 }
  0x38   :  { %301 = vmatprep.mubr.bf16.mxu0 %v721_v0 }
  0x3f   :  { %601 = vmatmul.mubr.msk.bf16.gmra.mxu0 %vm146_vm0, %v643_v16 }
  0xe7   :  { %v187_v17 = vpop.f32.mrf.mxu0  ;;  %v240_v19 = vpop.f32.mrf.mxu1 }
  0xe8   :  { %v385_v22 = vrot.slane %v240_v19, 2 }
  0xe9   :  { %v189_v18 = vpop.f32.mrf.mxu0  ;;  %v242_v21 = vpop.f32.mrf.mxu1 }
  0xea   :  { %v366_v25 = vrot.slane %v189_v18, 1 }
  0xeb   :  { %v191_v20 = vpop.f32.mrf.mxu0  ;;  %v244_v24 = vpop.f32.mrf.mxu1 }
  0xec   :  { %v386_v27 = vrot.slane %v244_v24, 2 }
  0xed   :  { %v193_v23 = vpop.f32.mrf.mxu0  ;;  %v246_v29 = vpop.f32.mrf.mxu1 }
  0xee   :  { %v367_v26 = vrot.slane %v193_v23, 1  ;;  %v387_v32 = vsel %vm384_vm2, %v385_v22, %v386_v27  ;;  %v722_v23 = vmov 1983009808  }
  0xef   :  { %v197_v28 = vpop.f32.mrf.mxu0  ;;  %v250_v35 = vpop.f32.mrf.mxu1  ;;  %v429_v24 = vunpack.c.l.s4 %v722_v23 }
  0xf0   :  { %v368_v30 = vsel %vm365_vm1, %v366_v25, %v367_v26  ;;  %v377_v31 = vadd.f32 %v367_v26, %v191_v20  ;;  %v388_v41 = vrot.slane %v250_v35, 2  ;;  %v431_v25 = vlaneseq }
  0xf1   :  { %v376_v33 = vadd.f32 %v368_v30, %v187_v17  ;;  %v199_v34 = vpop.f32.mrf.mxu0  ;;  %v760_v39 = vpop.f32.mrf.mxu1 }
  0xf2   :  { %v396_v36 = vadd.f32 %v386_v27, %v377_v31  ;;  %v369_v45 = vrot.slane %v199_v34, 1 }
  0xf3   :  { %v395_v37 = vadd.f32 %v387_v32, %v376_v33  ;;  %v201_v38 = vpop.f32.mrf.mxu0  ;;  %v254_v44 = vpop.f32.mrf.mxu1 }
  0xf4   :  { %v399_v40 = vsel %vm384_vm2, %v396_v36, -inf  ;;  %v389_v47 = vrot.slane %v254_v44, 2 }
  0xf5   :  { %v400_v42 = vmax.f32 %v395_v37, %v399_v40  ;;  %v203_v43 = vpop.f32.mrf.mxu0  ;;  %v256_v49 = vpop.f32.mrf.mxu1  ;;  %v604_v40 = vld [vmem:[%s797_s2] ss:$0 sm:$0xff] }
  0xf6   :  { %v370_v46 = vrot.slane %v203_v43, 1  ;;  %v390_v53 = vsel %vm384_vm2, %v388_v41, %v389_v47 }
  0xf7   :  { %v401_v48 = vrot.slane %v400_v42, 4  ;;  %v293_v50 = vpop.f32.mrf.mxu0  ;;  %v765_v57 = vpop.f32.mrf.mxu1 }
  0xf8   :  { %v371_v51 = vsel %vm365_vm1, %v369_v45, %v370_v46  ;;  %v379_v52 = vadd.f32 %v370_v46, %v201_v38  ;;  %v461_v0 = vrot.slane %v293_v50, 1  ;;  %v501_v27 = vrot.slane %v765_v57, 3 }
  0xf9   :  { %v402_v54 = vmax.f32 %v400_v42, %v401_v48  ;;  %v378_v55 = vadd.f32 %v371_v51, %v197_v28  ;;  %v295_v56 = vpop.f32.mrf.mxu0  ;;  %v346_v62 = vpop.f32.mrf.mxu1 }
  0xfa   :  { %v398_v58 = vadd.f32 %v389_v47, %v379_v52  ;;  %v479_v6 = vrot.slane %v295_v56, 2  ;;  %v498_v12 = vrot.slane %v346_v62, 3  ;;  %v430_v47 = vunpack.c.0.s8 %v429_v24 }
  0xfb   :  { %v403_v59 = vrot.slane %v402_v54, 2  ;;  %v397_v60 = vadd.f32 %v390_v53, %v378_v55  ;;  %v297_v61 = vpop.f32.mrf.mxu0  ;;  %v617_v5 = vpop.f32.mrf.mxu1 }
  0xfc   :  { %v407_v63 = vsel %vm384_vm2, %v398_v58, -inf  ;;  %v462_v1 = vrot.slane %v297_v61, 1  ;;  %v502_v30 = vrot.slane %v617_v5, 3 }
  0xfd   :  { %v404_v2 = vmax.f32 %v402_v54, %v403_v59  ;;  %v408_v3 = vmax.f32 %v397_v60, %v407_v63  ;;  %v299_v4 = vpop.f32.mrf.mxu0  ;;  %v349_v14 = vpop.f32.mrf.mxu1  ;;  %v432_v54 = vshrl.u32 %v431_v25, 7 }
  0xfe   :  { %v463_v7 = vsel %vm365_vm1, %v461_v0, %v462_v1  ;;  %v472_v8 = vadd.f32 %v462_v1, %v246_v29  ;;  %v480_v9 = vrot.slane %v299_v4, 2  ;;  %v499_v20 = vrot.slane %v349_v14, 3  ;;  %v605_v14 = vld [vmem:[%s797_s2 + $0x1] ss:$0 sm:$0xff]  ;;  %s689_s2 = scalar_lea.vmem %s571_s29, 64 }
  0xff   :  { %v409_v10 = vrot.slane %v408_v3, 4  ;;  %v471_v11 = vadd.f32 %v463_v7, %v242_v21  ;;  %v303_v13 = vpop.f32.mrf.mxu0  ;;  %v405_v17 = vrot.slane %v404_v2, 1  ;;  %v503_v56 = vsel %vm497_vm3, %v501_v27, %v502_v30  ;;  %p690_p10 = scmp.ne.s32.totalorder %s571_s29, %s689_s2  ;;  %p695_p12 = scmp.lt.s32.totalorder %s689_s2, %s689_s2 }
 0x100   :  { %v481_v15 = vsel %vm384_vm2, %v479_v6, %v480_v9  ;;  %v490_v16 = vadd.f32 %v480_v9, %v472_v8  ;;  %v500_v21 = vsel %vm497_vm3, %v498_v12, %v499_v20  ;;  %v464_v31 = vrot.slane %v303_v13, 1 }
 0x101   :  { %v410_v18 = vmax.f32 %v408_v3, %v409_v10  ;;  %v489_v19 = vadd.f32 %v481_v15, %v471_v11  ;;  %v305_v22 = vpop.f32.mrf.mxu0  ;;  %v406_v34 = vmax.f32 %v404_v2, %v405_v17  ;;  %v433_v63 = vsub.s32 %v430_v47, %v432_v54  ;;  %p696_p13 = por %p695_p12, %p694_p11 }
 0x102   :  { %v509_v28 = vadd.f32 %v499_v20, %v490_v16  ;;  %v482_v37 = vrot.slane %v305_v22, 2 }
 0x103   :  { %v411_v26 = vrot.slane %v410_v18, 2  ;;  %v307_v29 = vpop.f32.mrf.mxu0  ;;  %v508_v32 = vadd.f32 %v500_v21, %v489_v19  ;;  %v422_v52 = vadd.f32 %v604_v40, %v406_v34  ;;  %p697_p0 = pnand %p696_p13, %p690_p10 }
 0x104   :  { %v465_v33 = vrot.slane %v307_v29, 1  ;;  %v512_v36 = vsel %vm497_vm3, %v509_v28, -inf }
 0x105   :  { %v412_v35 = vmax.f32 %v410_v18, %v411_v26  ;;  %v309_v38 = vpop.f32.mrf.mxu0  ;;  %v513_v41 = vmax.f32 %v508_v32, %v512_v36  ;;  %v424_v62 = vmax.f32 %v422_v52, 0.0 }
 0x106   :  { %v466_v42 = vsel %vm365_vm1, %v464_v31, %v465_v33  ;;  %v474_v43 = vadd.f32 %v465_v33, %v256_v49  ;;  %v483_v44 = vrot.slane %v309_v38, 2 }
 0x107   :  { %v413_v45 = vrot.slane %v412_v35, 1  ;;  %v473_v46 = vadd.f32 %v466_v42, %v760_v39  ;;  %v514_v48 = vrot.slane %v513_v41, 4  ;;  %v434_v6 = vrot.slane %v424_v62, %v433_v63 }
 0x108   :  { %v484_v50 = vsel %vm384_vm2, %v482_v37, %v483_v44  ;;  %v492_v51 = vadd.f32 %v483_v44, %v474_v43 }
 0x109   :  { %v414_v53 = vmax.f32 %v412_v35, %v413_v45  ;;  %v491_v55 = vadd.f32 %v484_v50, %v473_v46  ;;  %v515_v57 = vmax.f32 %v513_v41, %v514_v48 }
 0x10a   :  { %v511_v58 = vadd.f32 %v502_v30, %v492_v51 }
 0x10b   :  { %v423_v59 = vadd.f32 %v604_v40, %v414_v53  ;;  %v510_v60 = vadd.f32 %v503_v56, %v491_v55  ;;  %v516_v49 = vrot.slane %v515_v57, 2 }
 0x10c   :  { %v520_v61 = vsel %vm497_vm3, %v511_v58, -inf }
 0x10d   :  { %v425_v39 = vmax.f32 %v423_v59, 0.0  ;;  %v521_v0 = vmax.f32 %v510_v60, %v520_v61  ;;  %v517_v1 = vmax.f32 %v515_v57, %v516_v49 }
 0x10f   :  { %v522_v2 = vrot.slane %v521_v0, 4  ;;  %v441_v3 = vrot.slane %v425_v39, %v433_v63  ;;  %v518_v4 = vrot.slane %v517_v1, 1 }
 0x111   :  { %v523_v5 = vmax.f32 %v521_v0, %v522_v2  ;;  %v446_v7 = vrot.slane %v441_v3, 7  ;;  %v519_v11 = vmax.f32 %v517_v1, %v518_v4 }
 0x113   :  { %v524_v8 = vrot.slane %v523_v5, 2  ;;  %v448_v9 = vsel %vm447_vm4, %v446_v7, %v434_v6  ;;  %v535_v17 = vadd.f32 %v605_v14, %v519_v11 }
 0x114   :  { %v450_v10 = vsel %vm449_vm5, %v446_v7, %v448_v9 }
 0x115   :  { %v525_v12 = vmax.f32 %v523_v5, %v524_v8  ;;  %v452_v13 = vsel %vm451_vm6, %v446_v7, %v450_v10  ;;  %v537_v20 = vmax.f32 %v535_v17, 0.0 }
 0x116   :  { %v454_v15 = vsel %vm453_vm7, %v446_v7, %v452_v13 }
 0x117   :  { %v526_v16 = vrot.slane %v525_v12, 1  ;;  %456 = vst [vmem:[#allocation7] sm:$0x3] %v454_v15  ;;  %v547_v24 = vrot.slane %v537_v20, %v433_v63 }
 0x119   :  { %v527_v18 = vmax.f32 %v525_v12, %v526_v16 }
 0x11b   :  { %v536_v19 = vadd.f32 %v605_v14, %v527_v18 }
 0x11d   :  { %v538_v22 = vmax.f32 %v536_v19, 0.0 }
 0x11f   :  { %v554_v23 = vrot.slane %v538_v22, %v433_v63 }
 0x121   :  { %v557_v25 = vrot.slane %v554_v23, 7 }
 0x123   :  { %v558_v26 = vsel %vm447_vm4, %v557_v25, %v547_v24 }
 0x124   :  { %v559_v27 = vsel %vm449_vm5, %v557_v25, %v558_v26 }
 0x125   :  { %v560_v21 = vsel %vm451_vm6, %v557_v25, %v559_v27 }
 0x126   :  { %v561_v28 = vsel %vm453_vm7, %v557_v25, %v560_v21 }
 0x127   :  { %563 = vst [vmem:[#allocation7 + $0x2] sm:$0x3] %v561_v28 }
 0x128   :  { %700 = shalt.err (!%p697_p0)
}
 0x129   :  { %573 = dma.vmem_to_hbm [thread:$0]  %s571_s29, 64, %s798_s3, [#allocation4]  }
 0x12a   :  { %713 = dma.done.wait [#allocation4], 64  }
 0x12b   :  { %714 = vsyncadd [#allocation4], 4294967232 }
 0x12c   :  { %577 = vsyncpa [#allocation3], 1 }
 0x12d   :  { %578 = vsyncpa [#allocation6], 1 }
 0x12e   :  { %579 = vsyncpa [#allocation4], 1 }

</bundles_post_ra>
